<compile_context>
chip_gen: v5e
topology: v5e:2x2
jax: 0.10.0
libtpu: 0.0.40
codegen_flags: <defaults>
</compile_context>

<pallas_src>
import numpy as np
import jax
import jax.numpy as jnp
from jax import lax
from jax.experimental import pallas as pl
from jax.experimental.pallas import tpu as pltpu

# ---- "config" (deterministic, in-script) -------------------------------------
PAD_TOKEN_ID = 1
MASK_TOKEN_ID = 31
VOCAB_SIZE = 32
HIDDEN_SIZE = 32
MAX_POSITION_EMBEDDINGS = 16
LAYER_NORM_EPS = 1e-5
MASK_RATIO_TRAIN = 0.15 * 0.8          # token_dropout scaling constant (ESM-style)
# emb_layer_norm_before = True, token_dropout = True, position_embedding_type = "absolute"


def lm_base_embeddings_kernel(ids_ref, amask_ref, tri_ref, seg_ref, table_ref,
                              gamma_ref, beta_ref, out_ref):
    """Single-invocation (gridless) kernel; every operand is resident in VMEM.

      ids_ref   : (R, 1)     int32  flattened input ids, R = B*S
      amask_ref : (R, 1)     f32    flattened attention mask
      tri_ref   : (R, R)     f32    constant: same-sequence & (s' <= s)  (per-seq cumsum)
      seg_ref   : (R, R)     f32    constant: same-sequence indicator    (per-seq sums)
      table_ref : (V+MP, H)  f32    [word_emb ; pos_emb] stacked along rows
      gamma/beta: (1, H)     f32    LayerNorm affine
      out_ref   : (R, H)     f32
    """
    ids = ids_ref[...]
    amask = amask_ref[...]
    tri = tri_ref[...]
    seg = seg_ref[...]
    table = table_ref[...]
    gamma = gamma_ref[...]
    beta = beta_ref[...]

    R = ids.shape[0]
    V = VOCAB_SIZE
    MP = MAX_POSITION_EMBEDDINGS

    not_pad_f = (ids != PAD_TOKEN_ID).astype(jnp.float32)            # (R, 1)
    is_mask_f = (ids == MASK_TOKEN_ID).astype(jnp.float32)           # (R, 1)

    # --- create_position_ids_from_input_ids: per-sequence cumsum of the not-pad
    #     mask, expressed as a tiny constant block-triangular matmul on the MXU.
    cum = jnp.dot(tri, not_pad_f, preferred_element_type=jnp.float32)        # (R, 1)
    pos_ids = (cum.astype(jnp.int32) * (ids != PAD_TOKEN_ID).astype(jnp.int32)
               + PAD_TOKEN_ID)                                               # (R, 1)

    # --- token-dropout rescale factor, constant within a sequence; `seg` both
    #     reduces over the sequence and broadcasts the result back to its rows.
    src_len = jnp.dot(seg, amask, preferred_element_type=jnp.float32)        # (R, 1)
    n_mask = jnp.dot(seg, is_mask_f, preferred_element_type=jnp.float32)     # (R, 1)
    scale = (1.0 - MASK_RATIO_TRAIN) / (1.0 - n_mask / src_len)              # (R, 1)
    coef = scale * (1.0 - is_mask_f)   # zero word rows at <mask>, scale the rest

    # --- fused lookup: ONE 2-D MXU matmul  [scaled word one-hot | pos one-hot] @ [W ; P]
    #     (token-dropout zeroing/scaling folded into the tiny one-hot, not the (R,H) slab).
    col = lax.broadcasted_iota(jnp.int32, (R, V + MP), 1)
    onehot = ((col == ids).astype(jnp.float32) * coef
              + (col == (pos_ids + V)).astype(jnp.float32))                  # (R, V+MP)
    # NOTE: f32 operands kept here on purpose at this toy scale (accuracy check is
    # 2e-3); at real sizes cast onehot/table to bf16 for the v6e/v7x MXU, and for a
    # real vocab replace the one-hot matmul with a scalar-prefetch DMA row gather.
    emb = jnp.dot(onehot, table, preferred_element_type=jnp.float32)         # (R, H)

    # --- LayerNorm over hidden (emb_layer_norm_before=True); gamma folded into the
    #     rsqrt scale, all elementwise math kept in f32 (v5e has no bf16 VPU/EUP).
    mean = jnp.mean(emb, axis=-1, keepdims=True)
    centered = emb - mean
    var = jnp.mean(centered * centered, axis=-1, keepdims=True)
    inv = lax.rsqrt(var + LAYER_NORM_EPS)
    normed = centered * (inv * gamma) + beta

    # --- gate by attention mask
    out_ref[...] = normed * amask


def lm_base_embeddings(input_ids, attention_mask, word_emb, pos_emb, ln_gamma, ln_beta):
    B, S = input_ids.shape
    V, H = word_emb.shape
    MP = pos_emb.shape[0]
    R = B * S

    # wrapper-side (free) layout prep
    ids_flat = input_ids.reshape(R, 1).astype(jnp.int32)
    amask_flat = attention_mask.reshape(R, 1).astype(jnp.float32)
    table = jnp.concatenate(
        [word_emb.astype(jnp.float32), pos_emb.astype(jnp.float32)], axis=0)   # (V+MP, H)
    gamma2 = ln_gamma.reshape(1, H).astype(jnp.float32)
    beta2 = ln_beta.reshape(1, H).astype(jnp.float32)

    # compile-time constant helper matrices (depend only on B, S):
    #   seg[r, r'] = 1 iff rows r, r' belong to the same sequence
    #   tri[r, r'] = 1 iff same sequence and s(r') <= s(r)   (causal / cumsum matrix)
    r = np.arange(R)
    same_seq = (r[:, None] // S) == (r[None, :] // S)
    tri_np = same_seq & ((r[None, :] % S) <= (r[:, None] % S))
    seg_c = jnp.asarray(same_seq, dtype=jnp.float32)
    tri_c = jnp.asarray(tri_np, dtype=jnp.float32)

    # Gridless pallas_call: whole arrays in VMEM, no 1-element-grid pipeline overhead.
    in_specs = [pl.BlockSpec(memory_space=pltpu.MemorySpace.VMEM) for _ in range(7)]
    out2d = pl.pallas_call(
        lm_base_embeddings_kernel,
        out_shape=jax.ShapeDtypeStruct((R, H), jnp.float32),
        in_specs=in_specs,
        out_specs=pl.BlockSpec(memory_space=pltpu.MemorySpace.VMEM),
    )(ids_flat, amask_flat, tri_c, seg_c, table, gamma2, beta2)

    return out2d.reshape(B, S, H)


def _reference(input_ids, attention_mask, word_emb, pos_emb, gamma, beta):
    # pure-JAX re-implementation of the PyTorch forward, for verification
    not_pad = (input_ids != PAD_TOKEN_ID).astype(jnp.int32)
    pos_ids = jnp.cumsum(not_pad, axis=1) * not_pad + PAD_TOKEN_ID
    embeds = word_emb[input_ids]
    is_mask = input_ids == MASK_TOKEN_ID
    embeds = jnp.where(is_mask[:, :, None], 0.0, embeds)
    src_len = attention_mask.sum(-1)
    ratio = is_mask.sum(-1).astype(jnp.float32) / src_len
    embeds = embeds * (1.0 - MASK_RATIO_TRAIN) / (1.0 - ratio)[:, None, None]
    embeds = embeds + pos_emb[pos_ids]
    mean = embeds.mean(-1, keepdims=True)
    var = ((embeds - mean) ** 2).mean(-1, keepdims=True)
    embeds = (embeds - mean) / jnp.sqrt(var + LAYER_NORM_EPS) * gamma + beta
    return embeds * attention_mask[:, :, None]


if __name__ == "__main__":
    B, S, H, V, MP = 2, 8, HIDDEN_SIZE, VOCAB_SIZE, MAX_POSITION_EMBEDDINGS
    key = jax.random.PRNGKey(0)
    k_ids, k_w, k_p = jax.random.split(key, 3)

    input_ids = jax.random.randint(k_ids, (B, S), 2, MASK_TOKEN_ID)   # avoid pad/mask
    input_ids = input_ids.at[0, 6:].set(PAD_TOKEN_ID)                 # padding tail
    input_ids = input_ids.at[0, 2].set(MASK_TOKEN_ID)                 # a masked token
    input_ids = input_ids.at[1, 5].set(MASK_TOKEN_ID)
    attention_mask = (input_ids != PAD_TOKEN_ID).astype(jnp.float32)

    word_emb = 0.02 * jax.random.normal(k_w, (V, H), dtype=jnp.float32)
    word_emb = word_emb.at[PAD_TOKEN_ID].set(0.0)                     # padding_idx row = 0
    pos_emb = 0.02 * jax.random.normal(k_p, (MP, H), dtype=jnp.float32)
    pos_emb = pos_emb.at[PAD_TOKEN_ID].set(0.0)                       # padding_idx row = 0
    ln_gamma = 1.0 + 0.01 * jnp.arange(H, dtype=jnp.float32)
    ln_beta = 0.01 * jnp.arange(H, dtype=jnp.float32)

    out = lm_base_embeddings(input_ids, attention_mask, word_emb, pos_emb, ln_gamma, ln_beta)
    out = jax.block_until_ready(out)

    ref = _reference(input_ids, attention_mask, word_emb, pos_emb, ln_gamma, ln_beta)
    assert out.shape == (B, S, H)
    assert jnp.allclose(out, ref, atol=2e-3, rtol=2e-3), "mismatch vs reference"

    print("KERNEL_OK")
</pallas_src>

<mosaic_0001>
module attributes {stable_mosaic.version = 11 : i64} {
  func.func @lm_base_embeddings_kernel(%arg0: memref<16x1xi32, #tpu.memory_space<vmem>>, %arg1: memref<16x1xf32, #tpu.memory_space<vmem>>, %arg2: memref<16x16xf32, #tpu.memory_space<vmem>>, %arg3: memref<16x16xf32, #tpu.memory_space<vmem>>, %arg4: memref<48x32xf32, #tpu.memory_space<vmem>>, %arg5: memref<1x32xf32, #tpu.memory_space<vmem>>, %arg6: memref<1x32xf32, #tpu.memory_space<vmem>>, %arg7: memref<16x32xf32, #tpu.memory_space<vmem>>) attributes {dimension_semantics = [], scalar_prefetch = 0 : i64, scratch_operands = 0 : i64, tpu.core_type = #tpu.core_type<tc>} {
    %c0 = arith.constant 0 : index
    %c0_0 = arith.constant 0 : index
    %0 = vector.load %arg0[%c0, %c0_0] : memref<16x1xi32, #tpu.memory_space<vmem>>, vector<16x1xi32>
    %c0_1 = arith.constant 0 : index
    %c0_2 = arith.constant 0 : index
    %1 = vector.load %arg1[%c0_1, %c0_2] : memref<16x1xf32, #tpu.memory_space<vmem>>, vector<16x1xf32>
    %c0_3 = arith.constant 0 : index
    %c0_4 = arith.constant 0 : index
    %2 = vector.load %arg2[%c0_3, %c0_4] : memref<16x16xf32, #tpu.memory_space<vmem>>, vector<16x16xf32>
    %c0_5 = arith.constant 0 : index
    %c0_6 = arith.constant 0 : index
    %3 = vector.load %arg3[%c0_5, %c0_6] : memref<16x16xf32, #tpu.memory_space<vmem>>, vector<16x16xf32>
    %c0_7 = arith.constant 0 : index
    %c0_8 = arith.constant 0 : index
    %4 = vector.load %arg4[%c0_7, %c0_8] : memref<48x32xf32, #tpu.memory_space<vmem>>, vector<48x32xf32>
    %c0_9 = arith.constant 0 : index
    %c0_10 = arith.constant 0 : index
    %5 = vector.load %arg5[%c0_9, %c0_10] : memref<1x32xf32, #tpu.memory_space<vmem>>, vector<1x32xf32>
    %c0_11 = arith.constant 0 : index
    %c0_12 = arith.constant 0 : index
    %6 = vector.load %arg6[%c0_11, %c0_12] : memref<1x32xf32, #tpu.memory_space<vmem>>, vector<1x32xf32>
    %c1_i32 = arith.constant 1 : i32
    %7 = vector.broadcast %c1_i32 : i32 to vector<16x1xi32>
    %8 = arith.cmpi ne, %0, %7 : vector<16x1xi32>
    %9 = arith.extui %8 : vector<16x1xi1> to vector<16x1xi32>
    %10 = arith.sitofp %9 : vector<16x1xi32> to vector<16x1xf32>
    %c31_i32 = arith.constant 31 : i32
    %11 = vector.broadcast %c31_i32 : i32 to vector<16x1xi32>
    %12 = arith.cmpi eq, %0, %11 : vector<16x1xi32>
    %13 = arith.extui %12 : vector<16x1xi1> to vector<16x1xi32>
    %14 = arith.sitofp %13 : vector<16x1xi32> to vector<16x1xf32>
    %cst = arith.constant dense<0.000000e+00> : vector<16x1xf32>
    %15 = tpu.matmul %2, %10, %cst {dimension_numbers = #tpu.dot_dimension_numbers<[1], [0], [0], [1], [0, 0, 1, 1], [], []>} : vector<16x16xf32>, vector<16x1xf32>, vector<16x1xf32> -> vector<16x1xf32>
    %16 = arith.fptosi %15 : vector<16x1xf32> to vector<16x1xi32>
    %c1_i32_13 = arith.constant 1 : i32
    %17 = vector.broadcast %c1_i32_13 : i32 to vector<16x1xi32>
    %18 = arith.cmpi ne, %0, %17 : vector<16x1xi32>
    %19 = arith.extui %18 : vector<16x1xi1> to vector<16x1xi32>
    %20 = arith.muli %16, %19 : vector<16x1xi32>
    %c1_i32_14 = arith.constant 1 : i32
    %21 = vector.broadcast %c1_i32_14 : i32 to vector<16x1xi32>
    %22 = arith.addi %20, %21 : vector<16x1xi32>
    %cst_15 = arith.constant dense<0.000000e+00> : vector<16x1xf32>
    %23 = tpu.matmul %3, %1, %cst_15 {dimension_numbers = #tpu.dot_dimension_numbers<[1], [0], [0], [1], [0, 0, 1, 1], [], []>} : vector<16x16xf32>, vector<16x1xf32>, vector<16x1xf32> -> vector<16x1xf32>
    %cst_16 = arith.constant dense<0.000000e+00> : vector<16x1xf32>
    %24 = tpu.matmul %3, %14, %cst_16 {dimension_numbers = #tpu.dot_dimension_numbers<[1], [0], [0], [1], [0, 0, 1, 1], [], []>} : vector<16x16xf32>, vector<16x1xf32>, vector<16x1xf32> -> vector<16x1xf32>
    %25 = arith.divf %24, %23 : vector<16x1xf32>
    %cst_17 = arith.constant 1.000000e+00 : f32
    %26 = vector.broadcast %cst_17 : f32 to vector<16x1xf32>
    %27 = arith.subf %26, %25 : vector<16x1xf32>
    %cst_18 = arith.constant 0.879999995 : f32
    %28 = vector.broadcast %cst_18 : f32 to vector<16x1xf32>
    %29 = arith.divf %28, %27 : vector<16x1xf32>
    %cst_19 = arith.constant 1.000000e+00 : f32
    %30 = vector.broadcast %cst_19 : f32 to vector<16x1xf32>
    %31 = arith.subf %30, %14 : vector<16x1xf32>
    %32 = arith.mulf %29, %31 : vector<16x1xf32>
    %33 = tpu.iota {dimensions = array<i32: 1>} : vector<16x48xi32>
    %34 = vector.broadcast %0 : vector<16x1xi32> to vector<16x48xi32>
    %35 = arith.cmpi eq, %33, %34 : vector<16x48xi32>
    %36 = arith.extui %35 : vector<16x48xi1> to vector<16x48xi32>
    %37 = arith.sitofp %36 : vector<16x48xi32> to vector<16x48xf32>
    %38 = vector.broadcast %32 : vector<16x1xf32> to vector<16x48xf32>
    %39 = arith.mulf %37, %38 : vector<16x48xf32>
    %c32_i32 = arith.constant 32 : i32
    %40 = vector.broadcast %c32_i32 : i32 to vector<16x1xi32>
    %41 = arith.addi %22, %40 : vector<16x1xi32>
    %42 = vector.broadcast %41 : vector<16x1xi32> to vector<16x48xi32>
    %43 = arith.cmpi eq, %33, %42 : vector<16x48xi32>
    %44 = arith.extui %43 : vector<16x48xi1> to vector<16x48xi32>
    %45 = arith.sitofp %44 : vector<16x48xi32> to vector<16x48xf32>
    %46 = arith.addf %39, %45 : vector<16x48xf32>
    %cst_20 = arith.constant dense<0.000000e+00> : vector<16x32xf32>
    %47 = tpu.matmul %46, %4, %cst_20 {dimension_numbers = #tpu.dot_dimension_numbers<[1], [0], [0], [1], [0, 0, 1, 1], [], []>} : vector<16x48xf32>, vector<48x32xf32>, vector<16x32xf32> -> vector<16x32xf32>
    %cst_21 = arith.constant dense<0.000000e+00> : vector<16xf32>
    %48 = vector.multi_reduction <add>, %47, %cst_21 [1] : vector<16x32xf32> to vector<16xf32>
    %49 = vector.shape_cast %48 : vector<16xf32> to vector<16x1xf32>
    %cst_22 = arith.constant 3.200000e+01 : f32
    %50 = vector.broadcast %cst_22 : f32 to vector<16x1xf32>
    %51 = arith.divf %49, %50 : vector<16x1xf32>
    %52 = vector.broadcast %51 : vector<16x1xf32> to vector<16x32xf32>
    %53 = arith.subf %47, %52 : vector<16x32xf32>
    %54 = arith.mulf %53, %53 : vector<16x32xf32>
    %cst_23 = arith.constant dense<0.000000e+00> : vector<16xf32>
    %55 = vector.multi_reduction <add>, %54, %cst_23 [1] : vector<16x32xf32> to vector<16xf32>
    %56 = vector.shape_cast %55 : vector<16xf32> to vector<16x1xf32>
    %cst_24 = arith.constant 3.200000e+01 : f32
    %57 = vector.broadcast %cst_24 : f32 to vector<16x1xf32>
    %58 = arith.divf %56, %57 : vector<16x1xf32>
    %cst_25 = arith.constant 9.99999974E-6 : f32
    %59 = vector.broadcast %cst_25 : f32 to vector<16x1xf32>
    %60 = arith.addf %58, %59 : vector<16x1xf32>
    %61 = math.rsqrt %60 : vector<16x1xf32>
    %62 = vector.broadcast %61 : vector<16x1xf32> to vector<16x32xf32>
    %63 = vector.broadcast %5 : vector<1x32xf32> to vector<16x32xf32>
    %64 = arith.mulf %62, %63 : vector<16x32xf32>
    %65 = arith.mulf %53, %64 : vector<16x32xf32>
    %66 = vector.broadcast %6 : vector<1x32xf32> to vector<16x32xf32>
    %67 = arith.addf %65, %66 : vector<16x32xf32>
    %68 = vector.broadcast %1 : vector<16x1xf32> to vector<16x32xf32>
    %69 = arith.mulf %67, %68 : vector<16x32xf32>
    %c0_26 = arith.constant 0 : index
    %c0_27 = arith.constant 0 : index
    %70 = vector.load %arg7[%c0_26, %c0_27] : memref<16x32xf32, #tpu.memory_space<vmem>>, vector<16x32xf32>
    tpu.vector_store %arg7[%c0_26, %c0_27], %69 {strides = array<i32>} : memref<16x32xf32, #tpu.memory_space<vmem>>, vector<16x32xf32>,
    return
  }
}

</mosaic_0001>

<bundles_post_ra>
// kernel: tpu_custom_call.1
= control target key start
LH: loop header
LB: loop body
LE: loop exit
PB: predicated region body
PF: predicated region fallthrough
CT: control target
= control target key end

     0   :  { %vm55_vm0 = vcmask 130048   ;;  %v457_v5 = vmov 0   ;;  %v458_v7 = vmov 1.0   ;;  %s602_s0 = inlined_call_operand.vmem [shape: s32[16,1], index: 0, kind: input, shape index: {}]   ;;  %s603_s1 = inlined_call_operand.vmem [shape: f32[16,1], index: 1, kind: input, shape index: {}]   ;;  %s604_s2 = inlined_call_operand.vmem [shape: f32[16,16], index: 2, kind: input, shape index: {}]   ;;  %s605_s3 = inlined_call_operand.vmem [shape: f32[16,16], index: 3, kind: input, shape index: {}]   ;;  %s606_s4 = inlined_call_operand.vmem [shape: f32[48,32], index: 4, kind: input, shape index: {}]   ;;  %s607_s5 = inlined_call_operand.vmem [shape: f32[1,32], index: 5, kind: input, shape index: {}]   ;;  %s608_s6 = inlined_call_operand.vmem [shape: f32[1,32], index: 6, kind: input, shape index: {}]   ;;  %s609_s7 = inlined_call_operand.hbm [shape: f32[16,32], index: 7, kind: output, shape index: {}]  }
   0x1   :  { %v507_v0 = vld [vmem:[%s603_s1 + $0x8] sm:$0xff]  ;;  %v512_v1 = vld [vmem:[%s603_s1] sm:$0xff]  ;;  %413 = vset.pattern.permute.xlu1 %v457_v5  ;;  %412 = vset.pattern.permute.xlu0 %v457_v5 }
   0x2   :  { %111 = vmatpush.msra.mxu1 %v507_v0  ;;  %v33_v2 = vld [vmem:[%s605_s3] sm:$0xff]  ;;  %v521_v3 = vld [vmem:[%s602_s0 + $0x8] sm:$0xff]  ;;  %414 = vset.pattern.permute.xlu2 %v457_v5 }
   0x3   :  { %v526_v4 = vld [vmem:[%s602_s0] sm:$0xff]  ;;  %vm44_vm1 = vcmp.ne.s32.totalorder %v521_v3, 1  ;;  %vm50_vm3 = vcmp.eq.s32.totalorder %v521_v3, 31 }
   0x4   :  { %vm43_vm2 = vcmp.ne.s32.totalorder %v526_v4, 1  ;;  %112 = vmatpush.msra.mxu1 %v512_v1  ;;  %v532_v6 = vsel %vm44_vm1, 1, %v457_v5  ;;  %379 = vmatpush.msk.msra.mxu0 %vm44_vm1, %v458_v7  ;;  %v31_v9 = vld [vmem:[%s604_s2] sm:$0xff]  ;;  %vm49_vm4 = vcmp.eq.s32.totalorder %v526_v4, 31 }
   0x5   :  { %v45_v8 = vsel %vm43_vm2, 1, %v457_v5  ;;  %383 = vmatmul.msk.f32.vlgmr.msra.gmra.mxu1 %vm55_vm0, %v33_v2  ;;  %385 = vmatpush.msk.msra.mxu2 %vm50_vm3, %v458_v7 }
   0x6   :  { %12 = vsyncpa [#allocation3], 0  ;;  %380 = vmatpush.msk.msra.mxu0 %vm43_vm2, %v458_v7  ;;  %212 = vperm.xlu0 %412, %v526_v4   ;;  %v34_v10 = vld [vmem:[%s605_s3 + $0x8] sm:$0xff]  ;;  %v459_v52 = vmov 0.0   ;;  %s363_s30 = sshll.u32 %s609_s7, 4  ;;  %s462_s8 = smov 128   ;;  %s364_s30 = int_to_ptr.hbm [resolvable:$true] %s363_s30 }
   0x7   :  { %381 = vmatmul.msk.f32.vlgmr.msra.gmra.mxu0 %vm55_vm0, %v31_v9  ;;  %386 = vmatpush.msk.msra.mxu2 %vm49_vm4, %v458_v7  ;;  %v32_v11 = vld [vmem:[%s604_s2 + $0x8] sm:$0xff]  ;;  %v377_v53 = vsel %vm49_vm4, 1.0, %v459_v52  ;;  %s463_s9 = smov 8  }
   0x8   :  { %387 = vmatmul.msk.f32.vlgmr.msra.gmra.mxu2 %vm55_vm0, %v33_v2  ;;  %v205_v59 = vsub.f32 1.0, %v377_v53 }
   0xd   :  { %384 = vmatmul.msk.f32.gmra.mxu1 %vm55_vm0, %v34_v10 }
   0xf   :  { %382 = vmatmul.msk.f32.gmra.mxu0 %vm55_vm0, %v32_v11 }
  0x10   :  { %388 = vmatmul.msk.f32.gmra.mxu2 %vm55_vm0, %v34_v10 }
  0x82   :  { %v114_v12 = vpop.f32.mrf.mxu1 }
  0x83   :  { %417 = vrcp.f32 %v114_v12  ;;  %v154_v24 = vand.u32 2147483648, %v114_v12  ;;  %v152_v26 = vand.u32 2147483647, %v114_v12  ;;  %vm148_vm7 = vweird.f32 %v114_v12 }
  0x84   :  { %v79_v13 = vpop.f32.mrf.mxu0 }
  0x85   :  { %vm395_vm5 = vcmp.lt.s32.totalorder %v79_v13, 0  ;;  %v396_v14 = vceil.f32 %v79_v13  ;;  %v397_v15 = vfloor.f32 %v79_v13  ;;  %v155_v31 = vor.u32 1.1754944e-38, %v154_v24 }
  0x86   :  { %vm153_vm9 = vcmp.eq.f32.partialorder %v152_v26, 8.507059e+37  ;;  %v378_v13 = vsel %vm50_vm3, 1.0, %v459_v52  ;;  %v38_v26 = vld [vmem:[%s606_s4 + $0x18] sm:$0xff] }
  0x87   :  { %v398_v16 = vsel %vm395_vm5, %v396_v14, %v397_v15 }
  0x88   :  { %v399_v17 = vcvt.f32.s32 %v398_v16 }
  0x89   :  { %v418_v18 = vpop.eup %417 }
  0x8a   :  { %v144_v19 = vmul.f32 %v418_v18, %v114_v12  ;;  %v117_v20 = vpop.f32.mrf.mxu1  ;;  %v87_v21 = vmul.u32 %v399_v17, %v45_v8  ;;  %vm149_vm6 = vweird.f32 %v418_v18  ;;  %v206_v17 = vsub.f32 1.0, %v378_v13 }
  0x8b   :  { %419 = vrcp.f32 %v117_v20  ;;  %v137_v28 = vpop.f32.mrf.mxu2  ;;  %vm150_vm8 = vmor %vm148_vm7, %vm149_vm6  ;;  %vm163_vm10 = vweird.f32 %v117_v20  ;;  %v169_v34 = vand.u32 2147483648, %v117_v20  ;;  %v167_v38 = vand.u32 2147483647, %v117_v20 }
  0x8c   :  { %v145_v22 = vsub.f32 1.0, %v144_v19  ;;  %v89_v23 = vadd.s32 1, %v87_v21  ;;  %v82_v56 = vpop.f32.mrf.mxu0 }
  0x8d   :  { %v170_v41 = vor.u32 1.1754944e-38, %v169_v34  ;;  %vm168_vm13 = vcmp.eq.f32.partialorder %v167_v38, 8.507059e+37  ;;  %v401_v61 = vceil.f32 %v82_v56  ;;  %v402_v62 = vfloor.f32 %v82_v56 }
  0x8e   :  { %v146_v25 = vmul.f32 %v418_v18, %v145_v22  ;;  %v235_v27 = vadd.s32 32, %v89_v23  ;;  %vm400_vm2 = vcmp.lt.s32.totalorder %v82_v56, 0 }
  0x8f   :  { %v403_v8 = vsel %vm400_vm2, %v401_v61, %v402_v62 }
  0x90   :  { %v147_v29 = vadd.f32 %v418_v18, %v146_v25  ;;  %238 = vperm.xlu1 %413, %v235_v27   ;;  %v404_v14 = vcvt.f32.s32 %v403_v8  ;;  %v39_v25 = vld [vmem:[%s606_s4 + $0x20] sm:$0xff]  ;;  %v36_v27 = vld [vmem:[%s606_s4 + $0x8] sm:$0xff] }
  0x91   :  { %v420_v30 = vpop.eup %419 }
  0x92   :  { %v159_v32 = vmul.f32 %v420_v30, %v117_v20  ;;  %v151_v33 = vsel %vm150_vm8, %v418_v18, %v147_v29  ;;  %vm164_vm11 = vweird.f32 %v420_v30  ;;  %v88_v21 = vmul.u32 %v404_v14, %v532_v6  ;;  %v37_v6 = vld [vmem:[%s606_s4 + $0x10] sm:$0xff] }
  0x93   :  { %v156_v35 = vsel %vm153_vm9, %v155_v31, %v151_v33  ;;  %vm165_vm12 = vmor %vm163_vm10, %vm164_vm11  ;;  %v140_v43 = vpop.f32.mrf.mxu2  ;;  %v209_v31 = vlaneseq  ;;  %vm251_vm9 = vcmask 392192  }
  0x94   :  { %v160_v36 = vsub.f32 1.0, %v159_v32  ;;  %v157_v37 = vmul.f32 %v156_v35, %v137_v28  ;;  %v90_v23 = vadd.s32 1, %v88_v21  ;;  %v35_v28 = vld [vmem:[%s606_s4] sm:$0xff] }
  0x95   :  { %v210_v33 = vand.u32 127, %v209_v31  ;;  %v416_v21 = vld [vmem:[%s608_s6] ss:$0 sm:$0xff] }
  0x96   :  { %v161_v39 = vmul.f32 %v420_v30, %v160_v36  ;;  %v173_v40 = vsub.f32 1.0, %v157_v37  ;;  %v236_v24 = vadd.s32 32, %v90_v23 }
  0x98   :  { %421 = vrcp.f32 %v173_v40  ;;  %v162_v42 = vadd.f32 %v420_v30, %v161_v39  ;;  %215 = vperm.xlu1 %413, %v521_v3   ;;  %v186_v51 = vand.u32 2147483648, %v173_v40  ;;  %v184_v55 = vand.u32 2147483647, %v173_v40  ;;  %v40_v3 = vld [vmem:[%s606_s4 + $0x28] sm:$0xff] }
  0x99   :  { %vm180_vm15 = vweird.f32 %v173_v40  ;;  %268 = vmatpush.msra.mxu3 %v40_v3 }
  0x9a   :  { %v166_v44 = vsel %vm165_vm12, %v420_v30, %v162_v42  ;;  %v187_v60 = vor.u32 1.1754944e-38, %v186_v51  ;;  %vm185_vm1 = vcmp.eq.f32.partialorder %v184_v55, 8.507059e+37  ;;  %v213_v30 = vpop.permute.xlu0 %212  ;;  %vm281_vm12 = vcmask 261120  }
  0x9b   :  { %v171_v45 = vsel %vm168_vm13, %v170_v41, %v166_v44  ;;  %269 = vmatpush.msra.mxu3 %v39_v25  ;;  %vm217_vm3 = vcmp.eq.s32.totalorder %v210_v33, %v213_v30 }
  0x9c   :  { %v172_v46 = vmul.f32 %v171_v45, %v140_v43  ;;  %v389_v35 = vsel %vm217_vm3, 1.0, %v459_v52 }
  0x9d   :  { %270 = vmatpush.msra.mxu3 %v38_v26 }
  0x9e   :  { %v422_v47 = vpop.eup %421  ;;  %v174_v48 = vsub.f32 1.0, %v172_v46 }
  0x9f   :  { %v176_v49 = vmul.f32 %v422_v47, %v173_v40  ;;  %vm181_vm14 = vweird.f32 %v422_v47  ;;  %271 = vmatpush.msra.mxu3 %v37_v6 }
  0xa0   :  { %423 = vrcp.f32 %v174_v48  ;;  %vm182_vm0 = vmor %vm180_vm15, %vm181_vm14  ;;  %v201_v9 = vand.u32 2147483648, %v174_v48  ;;  %v199_v12 = vand.u32 2147483647, %v174_v48  ;;  %vm195_vm5 = vweird.f32 %v174_v48 }
  0xa1   :  { %v177_v50 = vsub.f32 1.0, %v176_v49  ;;  %272 = vmatpush.msra.mxu3 %v36_v27  ;;  %v460_v49 = vmov 32.0  }
  0xa2   :  { %v202_v16 = vor.u32 1.1754944e-38, %v201_v9  ;;  %vm200_vm7 = vcmp.eq.f32.partialorder %v199_v12, 8.507059e+37  ;;  %425 = vrcp.f32 %v460_v49 }
  0xa3   :  { %v178_v54 = vmul.f32 %v422_v47, %v177_v50  ;;  %273 = vmatpush.msra.mxu3 %v35_v28 }
  0xa5   :  { %v179_v57 = vadd.f32 %v422_v47, %v178_v54 }
  0xa6   :  { %v424_v58 = vpop.eup %423 }
  0xa7   :  { %v191_v63 = vmul.f32 %v424_v58, %v174_v48  ;;  %v183_v2 = vsel %vm182_vm0, %v422_v47, %v179_v57  ;;  %vm196_vm4 = vweird.f32 %v424_v58 }
  0xa8   :  { %v188_v5 = vsel %vm185_vm1, %v187_v60, %v183_v2  ;;  %vm197_vm6 = vmor %vm195_vm5, %vm196_vm4  ;;  %v426_v50 = vpop.eup %425 }
  0xa9   :  { %v192_v7 = vsub.f32 1.0, %v191_v63  ;;  %v189_v4 = vmul.f32 0.88, %v188_v5  ;;  %v289_v51 = vmul.f32 32.0, %v426_v50  ;;  %vm293_vm13 = vweird.f32 %v426_v50 }
  0xab   :  { %v207_v10 = vmul.f32 %v205_v59, %v189_v4  ;;  %v193_v11 = vmul.f32 %v424_v58, %v192_v7 }
  0xad   :  { %225 = vperm.xlu0 %412, %v207_v10   ;;  %v194_v15 = vadd.f32 %v424_v58, %v193_v11 }
  0xaf   :  { %v198_v18 = vsel %vm197_vm6, %v424_v58, %v194_v15 }
  0xb0   :  { %v203_v19 = vsel %vm200_vm7, %v202_v16, %v198_v18  ;;  %v415_v16 = vld [vmem:[%s607_s5] ss:$0 sm:$0xff]  ;;  %s461_s5 = smov [#allocation2]  }
  0xb1   :  { %v204_v20 = vmul.f32 0.88, %v203_v19  ;;  %s361_s28 = sshll.u32 %s461_s5, 4  ;;  %s362_s28 = int_to_ptr.vmem [resolvable:$true] %s361_s28 }
  0xb3   :  { %v208_v22 = vmul.f32 %v206_v17, %v204_v20 }
  0xb5   :  { %230 = vperm.xlu2 %414, %v208_v22  }
  0xbd   :  { %241 = vperm.xlu2 %414, %v236_v24  }
 0x102   :  { %v239_v29 = vpop.permute.xlu1 %238 }
 0x103   :  { %vm243_vm8 = vcmp.eq.s32.totalorder %v210_v33, %v239_v29 }
 0x104   :  { %v391_v38 = vsel %vm243_vm8, 1.0, %v459_v52 }
 0x10a   :  { %v216_v34 = vpop.permute.xlu1 %215 }
 0x10b   :  { %vm218_vm10 = vcmp.eq.s32.totalorder %v210_v33, %v216_v34 }
 0x10c   :  { %v390_v41 = vsel %vm218_vm10, 1.0, %v459_v52 }
 0x10f   :  { %v231_v32 = vpop.permute.xlu2 %230 }
 0x110   :  { %v234_v43 = vmul.f32 %v390_v41, %v231_v32 }
 0x117   :  { %v242_v39 = vpop.permute.xlu2 %241 }
 0x118   :  { %vm244_vm11 = vcmp.eq.s32.totalorder %v210_v33, %v242_v39 }
 0x119   :  { %v392_v42 = vsel %vm244_vm11, 1.0, %v459_v52  ;;  %v290_v52 = vsub.f32 1.0, %v289_v51 }
 0x11a   :  { %v250_v44 = vadd.f32 %v392_v42, %v234_v43 }
 0x11b   :  { %v291_v53 = vmul.f32 %v426_v50, %v290_v52 }
 0x11d   :  { %v292_v54 = vadd.f32 %v426_v50, %v291_v53 }
 0x11f   :  { %v226_v36 = vpop.permute.xlu0 %225  ;;  %v294_v55 = vsel %vm293_vm13, %v426_v50, %v292_v54 }
 0x120   :  { %v233_v37 = vmul.f32 %v389_v35, %v226_v36 }
 0x122   :  { %v249_v40 = vadd.f32 %v391_v38, %v233_v37 }
 0x124   :  { %393 = vmatmul.msk.f32.vlgmr.msra.gmra.mxu3 %vm251_vm9, %v249_v40 }
 0x12c   :  { %394 = vmatmul.msk.f32.gmra.mxu3 %vm251_vm9, %v250_v44 }
 0x1a7   :  { %v275_v45 = vpop.f32.mrf.mxu3 }
 0x1a8   :  { %v282_v46 = vsel %vm281_vm12, %v275_v45, 0.0 }
 0x1a9   :  { %283 = vadd.xlane.f32.xlu0 %v282_v46 }
 0x1af   :  { %v278_v47 = vpop.f32.mrf.mxu3 }
 0x1b0   :  { %v285_v48 = vsel %vm281_vm12, %v278_v47, 0.0 }
 0x1b1   :  { %286 = vadd.xlane.f32.xlu1 %v285_v48 }
 0x1bd   :  { %345 = vperm.xlu0 %412, %v512_v1  }
 0x1ca   :  { %350 = vperm.xlu1 %413, %v507_v0  }
 0x21c   :  { %v284_v56 = vpop.xlane.xlu0 %283 }
 0x21d   :  { %v295_v57 = vmul.f32 %v294_v55, %v284_v56 }
 0x21f   :  { %v297_v58 = vsub.f32 %v275_v45, %v295_v57 }
 0x221   :  { %v299_v59 = vmul.f32 %v297_v58, %v297_v58 }
 0x223   :  { %v301_v60 = vsel %vm281_vm12, %v299_v59, 0.0 }
 0x224   :  { %302 = vadd.xlane.f32.xlu2 %v301_v60  ;;  %v287_v61 = vpop.xlane.xlu1 %286 }
 0x225   :  { %v296_v1 = vmul.f32 %v294_v55, %v287_v61 }
 0x227   :  { %v298_v62 = vsub.f32 %v278_v47, %v296_v1 }
 0x229   :  { %v300_v0 = vmul.f32 %v298_v62, %v298_v62 }
 0x22b   :  { %v304_v63 = vsel %vm281_vm12, %v300_v0, 0.0 }
 0x22c   :  { %305 = vadd.xlane.f32.xlu2 %v304_v63 }
 0x22f   :  { %v346_v26 = vpop.permute.xlu0 %345 }
 0x23c   :  { %v351_v32 = vpop.permute.xlu1 %350 }
 0x297   :  { %v303_v2 = vpop.xlane.xlu2 %302 }
 0x298   :  { %v307_v5 = vmul.f32 %v303_v2, %v294_v55 }
 0x29a   :  { %v309_v7 = vadd.f32 1e-05, %v307_v5 }
 0x29c   :  { %427 = vrsqrt.f32 %v309_v7  ;;  %vm317_vm15 = vweird.f32 %v309_v7 }
 0x29f   :  { %v306_v4 = vpop.xlane.xlu2 %305 }
 0x2a0   :  { %v308_v8 = vmul.f32 %v306_v4, %v294_v55 }
 0x2a2   :  { %v428_v9 = vpop.eup %427  ;;  %v310_v10 = vadd.f32 1e-05, %v308_v8 }
 0x2a3   :  { %v312_v11 = vmul.f32 %v428_v9, %v309_v7  ;;  %vm318_vm14 = vweird.f32 %v428_v9 }
 0x2a4   :  { %429 = vrsqrt.f32 %v310_v10  ;;  %vm319_vm0 = vmor %vm317_vm15, %vm318_vm14  ;;  %vm327_vm2 = vweird.f32 %v310_v10 }
 0x2a5   :  { %v313_v12 = vmul.f32 %v428_v9, %v312_v11 }
 0x2a7   :  { %v314_v13 = vmul.f32 0.5, %v313_v12 }
 0x2a9   :  { %v315_v14 = vsub.f32 1.5, %v314_v13 }
 0x2aa   :  { %v430_v15 = vpop.eup %429 }
 0x2ab   :  { %v316_v17 = vmul.f32 %v428_v9, %v315_v14  ;;  %v322_v18 = vmul.f32 %v430_v15, %v310_v10  ;;  %vm328_vm1 = vweird.f32 %v430_v15 }
 0x2ac   :  { %vm329_vm4 = vmor %vm327_vm2, %vm328_vm1 }
 0x2ad   :  { %v320_v19 = vsel %vm319_vm0, %v428_v9, %v316_v17  ;;  %v323_v20 = vmul.f32 %v430_v15, %v322_v18 }
 0x2ae   :  { %v334_v22 = vmul.f32 %v415_v16, %v320_v19 }
 0x2af   :  { %v324_v23 = vmul.f32 0.5, %v323_v20 }
 0x2b0   :  { %v336_v24 = vmul.f32 %v334_v22, %v297_v58 }
 0x2b1   :  { %v325_v3 = vsub.f32 1.5, %v324_v23 }
 0x2b2   :  { %v341_v25 = vadd.f32 %v416_v21, %v336_v24 }
 0x2b3   :  { %v326_v6 = vmul.f32 %v430_v15, %v325_v3 }
 0x2b4   :  { %v353_v27 = vmul.f32 %v346_v26, %v341_v25 }
 0x2b5   :  { %v330_v28 = vsel %vm329_vm4, %v430_v15, %v326_v6 }
 0x2b6   :  { %v335_v29 = vmul.f32 %v415_v16, %v330_v28  ;;  %355 = vst.msk [vmem:[#allocation2] sm:$0xff] %vm281_vm12, %v353_v27 }
 0x2b8   :  { %v337_v30 = vmul.f32 %v335_v29, %v298_v62 }
 0x2ba   :  { %v342_v31 = vadd.f32 %v416_v21, %v337_v30 }
 0x2bc   :  { %v354_v33 = vmul.f32 %v351_v32, %v342_v31 }
 0x2be   :  { %356 = vst.msk [vmem:[#allocation2 + $0x8] sm:$0xff] %vm281_vm12, %v354_v33 }
 0x2bf   :  { %369 = dma.vmem_to_hbm [thread:$0]  %s362_s28, 256, %s364_s30, [#allocation3], %s462_s8, %s462_s8, %s463_s9  }
 0x2c0   :  { %455 = dma.done.wait [#allocation3], 256  }
 0x2c1   :  { %456 = vsyncadd [#allocation3], 4294967040 }
 0x2c2   :  { %374 = vsyncpa [#allocation3], 1 }

</bundles_post_ra>
